<compile_context>
chip_gen: v7x
topology: tpu7x:2x2x1
jax: 0.10.0
libtpu: 0.0.40
codegen_flags: <defaults>
</compile_context>

<pallas_src>
import functools
import math

import jax
import jax.numpy as jnp
from jax import lax
from jax.experimental import pallas as pl
from jax.experimental.pallas import tpu as pltpu


def _round_up(x, m):
    return ((x + m - 1) // m) * m


def _recsys_kernel(user_ref, news_ref, wu_ref, wn_ref, bu_ref, bn_ref,
                   wou_ref, won_ref, bo_ref, out_ref, *, lane_chunk):
    """One batch tile of the fused forward.

    user_ref : [TB, Du] f32   user embeddings (natural layout, batch-tiled)
    news_ref : [TB, Dn] f32   news embeddings (natural layout, batch-tiled)
    wu_ref   : [H, Du]  f32   user_layer weight, transposed (VMEM-resident)
    wn_ref   : [H, Dn]  f32   news_layer weight, transposed (VMEM-resident)
    bu_ref   : [H, 1]   f32   user_layer bias column
    bn_ref   : [H, 1]   f32   news_layer bias column
    wou_ref  : [H, 1]   f32   output-layer weights for the user half
    won_ref  : [H, 1]   f32   output-layer weights for the news half
    bo_ref   : [1, 1]   f32   output-layer bias
    out_ref  : [1, TB]  f32   sigmoid probabilities, lane-dense
    """
    tile_b = out_ref.shape[-1]
    n_chunks = tile_b // lane_chunk
    contract = (((1,), (1,)), ((), ()))  # contract feature dims -> [H, chunk]

    def body(c, carry):
        start = pl.multiple_of(c * lane_chunk, lane_chunk)
        u = user_ref[pl.ds(start, lane_chunk), :]          # [chunk, Du]
        n = news_ref[pl.ds(start, lane_chunk), :]          # [chunk, Dn]

        # MXU: result is [H, chunk] with batch on lanes (no relayout needed).
        hu = lax.dot_general(wu_ref[...], u, contract,
                             preferred_element_type=jnp.float32)
        hn = lax.dot_general(wn_ref[...], n, contract,
                             preferred_element_type=jnp.float32)

        # VPU: bias + ReLU in f32.
        hu = jnp.maximum(hu + bu_ref[...], 0.0)
        hn = jnp.maximum(hn + bn_ref[...], 0.0)

        # Output Linear(2H, 1): VPU multiply + sublane (XLU) reduce; yields the
        # lane-dense [1, chunk] logits directly.
        logits = (jnp.sum(hu * wou_ref[...], axis=0, keepdims=True)
                  + jnp.sum(hn * won_ref[...], axis=0, keepdims=True)
                  + bo_ref[...])
        out_ref[:, pl.ds(start, lane_chunk)] = jax.nn.sigmoid(logits)
        return carry

    lax.fori_loop(0, n_chunks, body, 0, unroll=True)


def pack_params(params):
    """Hoisted, once-per-parameter-set packing (not on the per-call path)."""
    wu, bu, wn, bn, wo_u, wo_n, bo = params
    H = wu.shape[1]
    return (jnp.asarray(wu.T, jnp.float32),                 # [H, Du]
            jnp.asarray(wn.T, jnp.float32),                 # [H, Dn]
            jnp.asarray(bu, jnp.float32).reshape(H, 1),     # [H, 1]
            jnp.asarray(bn, jnp.float32).reshape(H, 1),     # [H, 1]
            jnp.asarray(wo_u, jnp.float32).reshape(H, 1),   # [H, 1]
            jnp.asarray(wo_n, jnp.float32).reshape(H, 1),   # [H, 1]
            jnp.asarray(bo, jnp.float32).reshape(1, 1))     # [1, 1]


def recommendation_forward(user_emb, news_emb, packed_params, *,
                           tile_b=4096, lane_chunk=512):
    """Fused forward. Returns [B, 1] f32 probabilities (PyTorch semantics)."""
    wu_t, wn_t, bu_c, bn_c, wou_c, won_c, bo_c = packed_params
    B, Du = user_emb.shape
    Dn = news_emb.shape[1]
    H = wu_t.shape[0]

    # Clamp the batch tile: proportional to B for small batches, and at most
    # ceil(B/2) (rounded to 128) so there are >=2 grid blocks for v7x's two
    # TensorCores whenever B allows it.
    half = _round_up(max((B + 1) // 2, 1), 128)
    tile_b = max(128, min(tile_b, half))
    lane_chunk = min(lane_chunk, tile_b)
    lane_chunk = math.gcd(tile_b, lane_chunk)   # ensure it divides tile_b

    num_blocks = pl.cdiv(B, tile_b)
    B_pad = num_blocks * tile_b

    # Natural-layout f32 activations; only pad (no transpose, no cast pass).
    user_f = user_emb.astype(jnp.float32)
    news_f = news_emb.astype(jnp.float32)
    if B_pad != B:
        user_f = jnp.pad(user_f, ((0, B_pad - B), (0, 0)))
        news_f = jnp.pad(news_f, ((0, B_pad - B), (0, 0)))

    param_bytes = 4 * (H * Du + H * Dn + 4 * H + 1)
    cost = pl.CostEstimate(
        flops=2 * B_pad * (Du + Dn) * H + 6 * B_pad * H,
        transcendentals=B_pad,
        bytes_accessed=B_pad * (Du + Dn) * 4 + B_pad * 4 + param_bytes)

    out = pl.pallas_call(
        functools.partial(_recsys_kernel, lane_chunk=lane_chunk),
        out_shape=jax.ShapeDtypeStruct((1, B_pad), jnp.float32),
        grid=(num_blocks,),
        in_specs=[
            pl.BlockSpec((tile_b, Du), lambda i: (i, 0)),   # batch-tiled user
            pl.BlockSpec((tile_b, Dn), lambda i: (i, 0)),   # batch-tiled news
            pl.BlockSpec((H, Du), lambda i: (0, 0)),        # resident Wu^T
            pl.BlockSpec((H, Dn), lambda i: (0, 0)),        # resident Wn^T
            pl.BlockSpec((H, 1), lambda i: (0, 0)),         # resident bu
            pl.BlockSpec((H, 1), lambda i: (0, 0)),         # resident bn
            pl.BlockSpec((H, 1), lambda i: (0, 0)),         # resident wo_user
            pl.BlockSpec((H, 1), lambda i: (0, 0)),         # resident wo_news
            pl.BlockSpec((1, 1), lambda i: (0, 0)),         # resident out bias
        ],
        out_specs=pl.BlockSpec((1, tile_b), lambda i: (0, i)),  # lane-dense out
        compiler_params=pltpu.CompilerParams(
            dimension_semantics=("parallel",),
            vmem_limit_bytes=24 * 1024 * 1024),
        cost_estimate=cost,
    )(user_f, news_f, wu_t, wn_t, bu_c, bn_c, wou_c, won_c, bo_c)

    # Slice the valid batch first (lane-dense), then reshape to the module's
    # [B, 1] output shape.
    return out[0, :B].reshape(B, 1)


def init_params(key, user_dim, news_dim, hidden_dim):
    """Deterministic synthetic parameters (weights stored [in, out])."""
    ks = jax.random.split(key, 7)
    wu = jax.random.normal(ks[0], (user_dim, hidden_dim), jnp.float32) * 0.05
    bu = jax.random.normal(ks[1], (1, hidden_dim), jnp.float32) * 0.05
    wn = jax.random.normal(ks[2], (news_dim, hidden_dim), jnp.float32) * 0.05
    bn = jax.random.normal(ks[3], (1, hidden_dim), jnp.float32) * 0.05
    # output_layer: Linear(2*hidden, 1) split into user-half / news-half.
    wo_u = jax.random.normal(ks[4], (hidden_dim, 1), jnp.float32) * 0.05
    wo_n = jax.random.normal(ks[5], (hidden_dim, 1), jnp.float32) * 0.05
    bo = jax.random.normal(ks[6], (1, 1), jnp.float32) * 0.05
    return (wu, bu, wn, bn, wo_u, wo_n, bo)


def reference_forward(user_emb, news_emb, params):
    """Pure-JAX f32 reference mirroring the PyTorch forward."""
    wu, bu, wn, bn, wo_u, wo_n, bo = params
    user_out = user_emb @ wu + bu
    news_out = news_emb @ wn + bn
    combined = jnp.concatenate([user_out, news_out], axis=1)
    w_out = jnp.concatenate([wo_u, wo_n], axis=0)                  # [2H, 1]
    logits = jnp.maximum(combined, 0.0) @ w_out + bo
    return jax.nn.sigmoid(logits)


if __name__ == "__main__":
    # Small shapes consistent with the module's forward.
    batch, user_dim, news_dim, hidden_dim = 8, 32, 48, 32

    key = jax.random.PRNGKey(0)
    k_u, k_n, k_p = jax.random.split(key, 3)
    user_emb = jax.random.normal(k_u, (batch, user_dim), jnp.float32)
    news_emb = jax.random.normal(k_n, (batch, news_dim), jnp.float32)
    params = init_params(k_p, user_dim, news_dim, hidden_dim)
    packed = pack_params(params)   # hoisted weight packing (once per params)

    out = jax.block_until_ready(
        recommendation_forward(user_emb, news_emb, packed))
    ref = reference_forward(user_emb, news_emb, params)
    assert out.shape == (batch, 1)
    assert jnp.allclose(out, ref, atol=1e-2, rtol=1e-2), "mismatch vs reference"

    # Exercise multi-block batch grid + padding + multi-chunk inner loop.
    B2 = 1000  # tile_b clamps to 512 -> 2 grid blocks, padded to 1024
    k_u2, k_n2 = jax.random.split(jax.random.PRNGKey(1), 2)
    user2 = jax.random.normal(k_u2, (B2, user_dim), jnp.float32)
    news2 = jax.random.normal(k_n2, (B2, news_dim), jnp.float32)
    out2 = jax.block_until_ready(
        recommendation_forward(user2, news2, packed, tile_b=512, lane_chunk=128))
    ref2 = reference_forward(user2, news2, params)
    assert out2.shape == (B2, 1)
    assert jnp.allclose(out2, ref2, atol=1e-2, rtol=1e-2), "mismatch (gridded)"

    print("KERNEL_OK")
</pallas_src>

<mosaic_0001>
module attributes {stable_mosaic.version = 11 : i64} {
  func.func @_recsys_kernel(%arg0: i32, %arg1: memref<128x32xf32, #tpu.memory_space<vmem>>, %arg2: memref<128x48xf32, #tpu.memory_space<vmem>>, %arg3: memref<32x32xf32, #tpu.memory_space<vmem>>, %arg4: memref<32x48xf32, #tpu.memory_space<vmem>>, %arg5: memref<32x1xf32, #tpu.memory_space<vmem>>, %arg6: memref<32x1xf32, #tpu.memory_space<vmem>>, %arg7: memref<32x1xf32, #tpu.memory_space<vmem>>, %arg8: memref<32x1xf32, #tpu.memory_space<vmem>>, %arg9: memref<1x1xf32, #tpu.memory_space<vmem>>, %arg10: memref<1x128xf32, #tpu.memory_space<vmem>>) attributes {dimension_semantics = [#tpu.dimension_semantics<parallel>], iteration_bounds = array<i64: 1>, scalar_prefetch = 0 : i64, scratch_operands = 0 : i64, tpu.core_type = #tpu.core_type<tc>, window_params = [{transform_indices = @transform_0, window_bounds = array<i64: 128, 32>}, {transform_indices = @transform_1, window_bounds = array<i64: 128, 48>}, {pipeline_mode = #tpu.pipeline_mode<synchronous>, transform_indices = @transform_2, window_bounds = array<i64: 32, 32>}, {pipeline_mode = #tpu.pipeline_mode<synchronous>, transform_indices = @transform_3, window_bounds = array<i64: 32, 48>}, {pipeline_mode = #tpu.pipeline_mode<synchronous>, transform_indices = @transform_4, window_bounds = array<i64: 32, 1>}, {pipeline_mode = #tpu.pipeline_mode<synchronous>, transform_indices = @transform_5, window_bounds = array<i64: 32, 1>}, {pipeline_mode = #tpu.pipeline_mode<synchronous>, transform_indices = @transform_6, window_bounds = array<i64: 32, 1>}, {pipeline_mode = #tpu.pipeline_mode<synchronous>, transform_indices = @transform_7, window_bounds = array<i64: 32, 1>}, {pipeline_mode = #tpu.pipeline_mode<synchronous>, transform_indices = @transform_8, window_bounds = array<i64: 1, 1>}, {transform_indices = @transform_9, window_bounds = array<i64: 1, 128>}]} {
    %c0_i32 = arith.constant 0 : i32
    %c128_i32 = arith.constant 128 : i32
    %0 = arith.muli %c0_i32, %c128_i32 : i32
    %1 = tpu.assume_multiple %0, 128 : i32
    %2 = arith.index_cast %1 : i32 to index
    %c0 = arith.constant 0 : index
    %3 = vector.load %arg1[%2, %c0] : memref<128x32xf32, #tpu.memory_space<vmem>>, vector<128x32xf32>
    %4 = arith.index_cast %1 : i32 to index
    %c0_0 = arith.constant 0 : index
    %5 = vector.load %arg2[%4, %c0_0] : memref<128x48xf32, #tpu.memory_space<vmem>>, vector<128x48xf32>
    %c0_1 = arith.constant 0 : index
    %c0_2 = arith.constant 0 : index
    %6 = vector.load %arg3[%c0_1, %c0_2] : memref<32x32xf32, #tpu.memory_space<vmem>>, vector<32x32xf32>
    %cst = arith.constant dense<0.000000e+00> : vector<32x128xf32>
    %7 = tpu.matmul %6, %3, %cst {dimension_numbers = #tpu.dot_dimension_numbers<[1], [1], [0], [0], [0, 0, 1, 0], [], []>} : vector<32x32xf32>, vector<128x32xf32>, vector<32x128xf32> -> vector<32x128xf32>
    %c0_3 = arith.constant 0 : index
    %c0_4 = arith.constant 0 : index
    %8 = vector.load %arg4[%c0_3, %c0_4] : memref<32x48xf32, #tpu.memory_space<vmem>>, vector<32x48xf32>
    %cst_5 = arith.constant dense<0.000000e+00> : vector<32x128xf32>
    %9 = tpu.matmul %8, %5, %cst_5 {dimension_numbers = #tpu.dot_dimension_numbers<[1], [1], [0], [0], [0, 0, 1, 0], [], []>} : vector<32x48xf32>, vector<128x48xf32>, vector<32x128xf32> -> vector<32x128xf32>
    %c0_6 = arith.constant 0 : index
    %c0_7 = arith.constant 0 : index
    %10 = vector.load %arg5[%c0_6, %c0_7] : memref<32x1xf32, #tpu.memory_space<vmem>>, vector<32x1xf32>
    %11 = vector.broadcast %10 : vector<32x1xf32> to vector<32x128xf32>
    %12 = arith.addf %7, %11 : vector<32x128xf32>
    %cst_8 = arith.constant 0.000000e+00 : f32
    %13 = vector.broadcast %cst_8 : f32 to vector<32x128xf32>
    %14 = arith.maximumf %12, %13 : vector<32x128xf32>
    %c0_9 = arith.constant 0 : index
    %c0_10 = arith.constant 0 : index
    %15 = vector.load %arg6[%c0_9, %c0_10] : memref<32x1xf32, #tpu.memory_space<vmem>>, vector<32x1xf32>
    %16 = vector.broadcast %15 : vector<32x1xf32> to vector<32x128xf32>
    %17 = arith.addf %9, %16 : vector<32x128xf32>
    %cst_11 = arith.constant 0.000000e+00 : f32
    %18 = vector.broadcast %cst_11 : f32 to vector<32x128xf32>
    %19 = arith.maximumf %17, %18 : vector<32x128xf32>
    %c0_12 = arith.constant 0 : index
    %c0_13 = arith.constant 0 : index
    %20 = vector.load %arg7[%c0_12, %c0_13] : memref<32x1xf32, #tpu.memory_space<vmem>>, vector<32x1xf32>
    %21 = vector.broadcast %20 : vector<32x1xf32> to vector<32x128xf32>
    %22 = arith.mulf %14, %21 : vector<32x128xf32>
    %cst_14 = arith.constant dense<0.000000e+00> : vector<128xf32>
    %23 = vector.multi_reduction <add>, %22, %cst_14 [0] : vector<32x128xf32> to vector<128xf32>
    %24 = vector.shape_cast %23 : vector<128xf32> to vector<1x128xf32>
    %c0_15 = arith.constant 0 : index
    %c0_16 = arith.constant 0 : index
    %25 = vector.load %arg8[%c0_15, %c0_16] : memref<32x1xf32, #tpu.memory_space<vmem>>, vector<32x1xf32>
    %26 = vector.broadcast %25 : vector<32x1xf32> to vector<32x128xf32>
    %27 = arith.mulf %19, %26 : vector<32x128xf32>
    %cst_17 = arith.constant dense<0.000000e+00> : vector<128xf32>
    %28 = vector.multi_reduction <add>, %27, %cst_17 [0] : vector<32x128xf32> to vector<128xf32>
    %29 = vector.shape_cast %28 : vector<128xf32> to vector<1x128xf32>
    %30 = arith.addf %24, %29 : vector<1x128xf32>
    %c0_18 = arith.constant 0 : index
    %c0_19 = arith.constant 0 : index
    %31 = vector.load %arg9[%c0_18, %c0_19] : memref<1x1xf32, #tpu.memory_space<vmem>>, vector<1x1xf32>
    %32 = vector.broadcast %31 : vector<1x1xf32> to vector<1x128xf32>
    %33 = arith.addf %30, %32 : vector<1x128xf32>
    %34 = arith.negf %33 : vector<1x128xf32>
    %35 = math.exp %34 : vector<1x128xf32>
    %cst_20 = arith.constant 1.000000e+00 : f32
    %36 = vector.broadcast %cst_20 : f32 to vector<1x128xf32>
    %37 = arith.addf %36, %35 : vector<1x128xf32>
    %38 = arith.divf %36, %37 : vector<1x128xf32>
    %c0_21 = arith.constant 0 : index
    %39 = arith.index_cast %1 : i32 to index
    %40 = vector.load %arg10[%c0_21, %39] : memref<1x128xf32, #tpu.memory_space<vmem>>, vector<1x128xf32>
    tpu.vector_store %arg10[%c0_21, %39], %38 {strides = array<i32>} : memref<1x128xf32, #tpu.memory_space<vmem>>, vector<1x128xf32>,
    %c1_i32 = arith.constant 1 : i32
    return
  }
  func.func @transform_0(%arg0: i32) -> (i32, i32) {
    %c0_i32 = arith.constant 0 : i32
    %c0_i32_0 = arith.constant 0 : i32
    return %arg0, %c0_i32 : i32, i32
  }
  func.func @transform_1(%arg0: i32) -> (i32, i32) {
    %c0_i32 = arith.constant 0 : i32
    %c0_i32_0 = arith.constant 0 : i32
    return %arg0, %c0_i32 : i32, i32
  }
  func.func @transform_2(%arg0: i32) -> (i32, i32) {
    %c0_i32 = arith.constant 0 : i32
    %c0_i32_0 = arith.constant 0 : i32
    %c0_i32_1 = arith.constant 0 : i32
    return %c0_i32, %c0_i32_0 : i32, i32
  }
  func.func @transform_3(%arg0: i32) -> (i32, i32) {
    %c0_i32 = arith.constant 0 : i32
    %c0_i32_0 = arith.constant 0 : i32
    %c0_i32_1 = arith.constant 0 : i32
    return %c0_i32, %c0_i32_0 : i32, i32
  }
  func.func @transform_4(%arg0: i32) -> (i32, i32) {
    %c0_i32 = arith.constant 0 : i32
    %c0_i32_0 = arith.constant 0 : i32
    %c0_i32_1 = arith.constant 0 : i32
    return %c0_i32, %c0_i32_0 : i32, i32
  }
  func.func @transform_5(%arg0: i32) -> (i32, i32) {
    %c0_i32 = arith.constant 0 : i32
    %c0_i32_0 = arith.constant 0 : i32
    %c0_i32_1 = arith.constant 0 : i32
    return %c0_i32, %c0_i32_0 : i32, i32
  }
  func.func @transform_6(%arg0: i32) -> (i32, i32) {
    %c0_i32 = arith.constant 0 : i32
    %c0_i32_0 = arith.constant 0 : i32
    %c0_i32_1 = arith.constant 0 : i32
    return %c0_i32, %c0_i32_0 : i32, i32
  }
  func.func @transform_7(%arg0: i32) -> (i32, i32) {
    %c0_i32 = arith.constant 0 : i32
    %c0_i32_0 = arith.constant 0 : i32
    %c0_i32_1 = arith.constant 0 : i32
    return %c0_i32, %c0_i32_0 : i32, i32
  }
  func.func @transform_8(%arg0: i32) -> (i32, i32) {
    %c0_i32 = arith.constant 0 : i32
    %c0_i32_0 = arith.constant 0 : i32
    %c0_i32_1 = arith.constant 0 : i32
    return %c0_i32, %c0_i32_0 : i32, i32
  }
  func.func @transform_9(%arg0: i32) -> (i32, i32) {
    %c0_i32 = arith.constant 0 : i32
    %c0_i32_0 = arith.constant 0 : i32
    return %c0_i32, %arg0 : i32, i32
  }
}

</mosaic_0001>

<bundles_post_ra>
// kernel: tpu_custom_call.1
= control target key start
LH: loop header
LB: loop body
LE: loop exit
PB: predicated region body
PF: predicated region fallthrough
CT: control target
= control target key end

     0   :  { %s1134_s0 = inlined_call_operand.vmem [shape: f32[128,32], index: 0, kind: input, shape index: {}]   ;;  %s1135_s1 = inlined_call_operand.vmem [shape: f32[128,48], index: 1, kind: input, shape index: {}]   ;;  %s1136_s2 = inlined_call_operand.vmem [shape: f32[32,32], index: 2, kind: input, shape index: {}]   ;;  %s1137_s3 = inlined_call_operand.vmem [shape: f32[32,48], index: 3, kind: input, shape index: {}]   ;;  %s1138_s4 = inlined_call_operand.vmem [shape: f32[32,1], index: 4, kind: input, shape index: {}]   ;;  %s1139_s5 = inlined_call_operand.vmem [shape: f32[32,1], index: 5, kind: input, shape index: {}]   ;;  %s1140_s6 = inlined_call_operand.vmem [shape: f32[32,1], index: 6, kind: input, shape index: {}]   ;;  %s1141_s7 = inlined_call_operand.vmem [shape: f32[32,1], index: 7, kind: input, shape index: {}]   ;;  %s1142_s8 = inlined_call_operand.<no memory space> [shape: f32[1,1], index: 8, kind: input, shape index: {}]   ;;  %s1143_s9 = inlined_call_operand.hbm [shape: f32[1,128], index: 9, kind: output, shape index: {}]  }
   0x1   :  { %v14_v0 = vstv %s1142_s8 }
   0x2   :  { %15 = vst [vmem:[#allocation2] sm:$0x1] %v14_v0 }
   0x3   :  { %v35_v1 = vld [vmem:[%s1134_s0] sm:$0xff]  ;;  %v36_v2 = vld [vmem:[%s1134_s0 + $0x8] sm:$0xff]  ;;  %vm99_vm0 = vcmask 261120   ;;  %vm273_vm1 = vcmask 392192   ;;  %v37_v7 = vld [vmem:[%s1134_s0 + $0x10] sm:$0xff]  ;;  %v815_v8 = vmov 0  }
   0x4   :  { %v51_v3 = vld [vmem:[%s1135_s1] sm:$0xff]  ;;  %v687_v4 = vpack.c.bf16 %v36_v2, %v35_v1  ;;  %vm881_vm2 = vmpackc.low %vm99_vm0, %vm99_vm0  ;;  %v52_v6 = vld [vmem:[%s1135_s1 + $0x8] sm:$0xff]  ;;  %785 = vset.pattern.permute.xlu0 %v815_v8  ;;  %786 = vset.pattern.permute.xlu1 %v815_v8 }
   0x5   :  { %v735_v9 = vpack.c.bf16 %v52_v6, %v51_v3  ;;  %vm893_vm3 = vmpackc.low %vm273_vm1, %vm273_vm1  ;;  %v38_v11 = vld [vmem:[%s1134_s0 + $0x18] sm:$0xff]  ;;  %v53_v12 = vld [vmem:[%s1135_s1 + $0x10] sm:$0xff] }
   0x6   :  { %689 = vmatprep.subr.msk.bf16.mxu0 %vm881_vm2, %v687_v4  ;;  %v693_v13 = vpack.c.bf16 %v38_v11, %v37_v7  ;;  %v54_v14 = vld [vmem:[%s1135_s1 + $0x18] sm:$0xff]  ;;  %v39_v16 = vld [vmem:[%s1134_s0 + $0x20] sm:$0xff]  ;;  %v40_v17 = vld [vmem:[%s1134_s0 + $0x28] sm:$0xff] }
   0x7   :  { %737 = vmatprep.subr.msk.bf16.mxu1 %vm893_vm3, %v735_v9  ;;  %692 = vmatpush3.bf16.xpose.msk.msra.mxu0 %vm881_vm2, %v687_v4  ;;  %v741_v15 = vpack.c.bf16 %v54_v14, %v53_v12  ;;  %v55_v18 = vld [vmem:[%s1135_s1 + $0x20] sm:$0xff]  ;;  %v56_v19 = vld [vmem:[%s1135_s1 + $0x28] sm:$0xff]  ;;  %v699_v20 = vpack.c.bf16 %v40_v17, %v39_v16  ;;  %v41_v24 = vld [vmem:[%s1134_s0 + $0x30] sm:$0xff] }
   0x8   :  { %740 = vmatpush3.bf16.xpose.msk.msra.mxu1 %vm893_vm3, %v735_v9  ;;  %695 = vmatprep.subr.msk.bf16.mxu0 %vm881_vm2, %v693_v13  ;;  %v747_v21 = vpack.c.bf16 %v56_v19, %v55_v18  ;;  %v67_v22 = vld [vmem:[%s1136_s2] sm:$0xff]  ;;  %v42_v25 = vld [vmem:[%s1134_s0 + $0x38] sm:$0xff]  ;;  %v57_v28 = vld [vmem:[%s1135_s1 + $0x30] sm:$0xff] }
   0x9   :  { %743 = vmatprep.subr.msk.bf16.mxu1 %vm893_vm3, %v741_v15  ;;  %v71_v23 = vld [vmem:[%s1137_s3] sm:$0xff]  ;;  %643 = vmatprep.mubr.msk.f32.mxu0 %vm99_vm0, %v67_v22  ;;  %v58_v29 = vld [vmem:[%s1135_s1 + $0x38] sm:$0xff]  ;;  %v76_v30 = vld [vmem:[%s1138_s4 + $0x8] sm:$0xff]  ;;  %v705_v32 = vpack.c.bf16 %v42_v25, %v41_v24 }
   0xa   :  { %681 = vmatprep.mubr.msk.f32.mxu1 %vm273_vm1, %v71_v23  ;;  %v75_v26 = vld [vmem:[%s1138_s4] sm:$0xff]  ;;  %v250_v31 = vld [vmem:[%s1139_s5 + $0x8] sm:$0xff]  ;;  %v753_v33 = vpack.c.bf16 %v58_v29, %v57_v28 }
   0xb   :  { %v249_v27 = vld [vmem:[%s1139_s5] sm:$0xff]  ;;  %81 = vperm.xlu0 %785, %v75_v26  }
   0xc   :  { %255 = vperm.xlu1 %786, %v249_v27  }
   0xf   :  { %698 = vmatpush3.bf16.xpose.msk.msra.mxu0 %vm881_vm2, %v693_v13  ;;  %86 = vperm.xlu0 %785, %v76_v30  }
  0x10   :  { %746 = vmatpush3.bf16.xpose.msk.msra.mxu1 %vm893_vm3, %v741_v15  ;;  %701 = vmatprep.subr.msk.bf16.mxu0 %vm881_vm2, %v699_v20 }
  0x11   :  { %749 = vmatprep.subr.msk.bf16.mxu1 %vm893_vm3, %v747_v21  ;;  %260 = vperm.xlu1 %786, %v250_v31  }
  0x12   :  { %16 = vsyncpa [#allocation4], 0  ;;  %v77_v34 = vld [vmem:[%s1138_s4 + $0x10] sm:$0xff]  ;;  %v43_v36 = vld [vmem:[%s1134_s0 + $0x40] sm:$0xff] }
  0x13   :  { %v251_v35 = vld [vmem:[%s1139_s5 + $0x10] sm:$0xff]  ;;  %v44_v37 = vld [vmem:[%s1134_s0 + $0x48] sm:$0xff]  ;;  %v59_v38 = vld [vmem:[%s1135_s1 + $0x40] sm:$0xff]  ;;  %91 = vperm.xlu0 %785, %v77_v34  }
  0x14   :  { %v60_v39 = vld [vmem:[%s1135_s1 + $0x48] sm:$0xff]  ;;  %v78_v40 = vld [vmem:[%s1138_s4 + $0x18] sm:$0xff]  ;;  %v711_v42 = vpack.c.bf16 %v44_v37, %v43_v36  ;;  %v423_v44 = vld [vmem:[%s1140_s6] sm:$0xff] }
  0x15   :  { %265 = vperm.xlu1 %786, %v251_v35   ;;  %v252_v41 = vld [vmem:[%s1139_s5 + $0x18] sm:$0xff]  ;;  %v759_v43 = vpack.c.bf16 %v60_v39, %v59_v38  ;;  %v424_v45 = vld [vmem:[%s1140_s6 + $0x8] sm:$0xff]  ;;  %v45_v46 = vld [vmem:[%s1134_s0 + $0x50] sm:$0xff] }
  0x16   :  { %v46_v47 = vld [vmem:[%s1134_s0 + $0x58] sm:$0xff]  ;;  %v61_v48 = vld [vmem:[%s1135_s1 + $0x50] sm:$0xff]  ;;  %v460_v50 = vld [vmem:[%s1141_s7] sm:$0xff] }
  0x17   :  { %704 = vmatpush3.bf16.xpose.msk.msra.mxu0 %vm881_vm2, %v699_v20  ;;  %96 = vperm.xlu0 %785, %v78_v40   ;;  %v62_v49 = vld [vmem:[%s1135_s1 + $0x58] sm:$0xff]  ;;  %v461_v51 = vld [vmem:[%s1141_s7 + $0x8] sm:$0xff]  ;;  %v717_v52 = vpack.c.bf16 %v46_v47, %v45_v46  ;;  %v425_v54 = vld [vmem:[%s1140_s6 + $0x10] sm:$0xff] }
  0x18   :  { %752 = vmatpush3.bf16.xpose.msk.msra.mxu1 %vm893_vm3, %v747_v21  ;;  %707 = vmatprep.subr.msk.bf16.mxu0 %vm881_vm2, %v705_v32  ;;  %v765_v53 = vpack.c.bf16 %v62_v49, %v61_v48  ;;  %v462_v55 = vld [vmem:[%s1141_s7 + $0x10] sm:$0xff]  ;;  %v47_v56 = vld [vmem:[%s1134_s0 + $0x60] sm:$0xff]  ;;  %v48_v57 = vld [vmem:[%s1134_s0 + $0x68] sm:$0xff] }
  0x19   :  { %755 = vmatprep.subr.msk.bf16.mxu1 %vm893_vm3, %v753_v33  ;;  %270 = vperm.xlu1 %786, %v252_v41   ;;  %v63_v58 = vld [vmem:[%s1135_s1 + $0x60] sm:$0xff]  ;;  %v64_v59 = vld [vmem:[%s1135_s1 + $0x68] sm:$0xff]  ;;  %v426_v60 = vld [vmem:[%s1140_s6 + $0x18] sm:$0xff]  ;;  %v723_v62 = vpack.c.bf16 %v48_v57, %v47_v56 }
  0x1a   :  { %v463_v61 = vld [vmem:[%s1141_s7 + $0x18] sm:$0xff]  ;;  %v771_v63 = vpack.c.bf16 %v64_v59, %v63_v58  ;;  %v498_v0 = vld [vmem:[#allocation2] sm:$0x1]  ;;  %v49_v1 = vld [vmem:[%s1134_s0 + $0x70] sm:$0xff] }
  0x1b   :  { %429 = vperm.xlu0 %785, %v423_v44   ;;  %v50_v2 = vld [vmem:[%s1134_s0 + $0x78] sm:$0xff]  ;;  %v65_v3 = vld [vmem:[%s1135_s1 + $0x70] sm:$0xff]  ;;  %v68_v8 = vld [vmem:[%s1136_s2 + $0x8] sm:$0xff] }
  0x1c   :  { %v66_v4 = vld [vmem:[%s1135_s1 + $0x78] sm:$0xff]  ;;  %v729_v6 = vpack.c.bf16 %v50_v2, %v49_v1  ;;  %v72_v9 = vld [vmem:[%s1137_s3 + $0x8] sm:$0xff]  ;;  %v69_v11 = vld [vmem:[%s1136_s2 + $0x10] sm:$0xff] }
  0x1d   :  { %434 = vperm.xlu1 %786, %v424_v45   ;;  %v777_v7 = vpack.c.bf16 %v66_v4, %v65_v3  ;;  %v73_v5 = vld [vmem:[%s1137_s3 + $0x10] sm:$0xff]  ;;  %v70_v10 = vld [vmem:[%s1136_s2 + $0x18] sm:$0xff]  ;;  %v504_v4 = vlaneseq  ;;  %s816_s2 = smov [#allocation3]  }
  0x1e   :  { %v74_v12 = vld [vmem:[%s1137_s3 + $0x18] sm:$0xff]  ;;  %s522_s3 = sshll.u32 %s816_s2, 4  ;;  %s523_s3 = int_to_ptr.vmem [resolvable:$true] %s522_s3 }
  0x1f   :  { %710 = vmatpush3.bf16.xpose.msk.msra.mxu0 %vm881_vm2, %v705_v32  ;;  %466 = vperm.xlu0 %785, %v460_v50   ;;  %s791_s26 = scalar_lea.vmem %s523_s3, 16  ;;  %s795_s27 = scalar_lea.vmem %s523_s3, 32 }
  0x20   :  { %758 = vmatpush3.bf16.xpose.msk.msra.mxu1 %vm893_vm3, %v753_v33  ;;  %713 = vmatprep.subr.msk.bf16.mxu0 %vm881_vm2, %v711_v42  ;;  %p792_p0 = scmp.ne.s32.totalorder %s523_s3, %s791_s26  ;;  %p796_p1 = scmp.lt.s32.totalorder %s523_s3, %s523_s3 }
  0x21   :  { %761 = vmatprep.subr.msk.bf16.mxu1 %vm893_vm3, %v759_v43  ;;  %471 = vperm.xlu1 %786, %v461_v51   ;;  %p797_p2 = scmp.lt.s32.totalorder %s795_s27, %s791_s26 }
  0x23   :  { %439 = vperm.xlu0 %785, %v425_v54   ;;  %p798_p3 = por %p797_p2, %p796_p1 }
  0x25   :  { %476 = vperm.xlu1 %786, %v462_v55   ;;  %p799_p4 = pnand %p798_p3, %p792_p0 }
  0x27   :  { %716 = vmatpush3.bf16.xpose.msk.msra.mxu0 %vm881_vm2, %v711_v42  ;;  %444 = vperm.xlu0 %785, %v426_v60  }
  0x28   :  { %764 = vmatpush3.bf16.xpose.msk.msra.mxu1 %vm893_vm3, %v759_v43  ;;  %719 = vmatprep.subr.msk.bf16.mxu0 %vm881_vm2, %v717_v52 }
  0x29   :  { %767 = vmatprep.subr.msk.bf16.mxu1 %vm893_vm3, %v765_v53  ;;  %481 = vperm.xlu1 %786, %v463_v61  }
  0x2b   :  { %501 = vperm.xlu0 %785, %v498_v0  }
  0x2f   :  { %722 = vmatpush3.bf16.xpose.msk.msra.mxu0 %vm881_vm2, %v717_v52 }
  0x30   :  { %770 = vmatpush3.bf16.xpose.msk.msra.mxu1 %vm893_vm3, %v765_v53  ;;  %725 = vmatprep.subr.msk.bf16.mxu0 %vm881_vm2, %v723_v62 }
  0x31   :  { %773 = vmatprep.subr.msk.bf16.mxu1 %vm893_vm3, %v771_v63 }
  0x37   :  { %728 = vmatpush3.bf16.xpose.msk.msra.mxu0 %vm881_vm2, %v723_v62 }
  0x38   :  { %776 = vmatpush3.bf16.xpose.msk.msra.mxu1 %vm893_vm3, %v771_v63  ;;  %731 = vmatprep.subr.msk.bf16.mxu0 %vm881_vm2, %v729_v6 }
  0x39   :  { %779 = vmatprep.subr.msk.bf16.mxu1 %vm893_vm3, %v777_v7 }
  0x3f   :  { %734 = vmatpush3.bf16.xpose.msk.msra.mxu0 %vm881_vm2, %v729_v6 }
  0x40   :  { %782 = vmatpush3.bf16.xpose.msk.msra.mxu1 %vm893_vm3, %v777_v7 }
  0x46   :  { %644 = vmatmul.mubr.msk.f32.vlgmr.msra.gmra.mrb[0].mxu0 %vm99_vm0, %v68_v8 }
  0x47   :  { %682 = vmatmul.mubr.msk.f32.vlgmr.msra.gmra.mrb[0].mxu1 %vm273_vm1, %v72_v9  ;;  %646 = vmatprep.mubr.msk.f32.mxu0 %vm99_vm0, %v69_v11  ;;  %v505_v11 = vshrl.u32 %v504_v4, 7 }
  0x48   :  { %684 = vmatprep.mubr.msk.f32.mxu1 %vm273_vm1, %v73_v5 }
  0x4a   :  { %647 = vmatmul.mubr.msk.f32.gmra.mrb[2].mxu0 %vm99_vm0, %v70_v10 }
  0x4b   :  { %685 = vmatmul.mubr.msk.f32.gmra.mrb[2].mxu1 %vm273_vm1, %v74_v12 }
  0x8a   :  { %v82_v13 = vpop.permute.xlu0 %81 }
  0x8b   :  { %v256_v14 = vpop.permute.xlu1 %255 }
  0x8e   :  { %v87_v15 = vpop.permute.xlu0 %86 }
  0x90   :  { %v261_v16 = vpop.permute.xlu1 %260 }
  0x92   :  { %v92_v17 = vpop.permute.xlu0 %91 }
  0x94   :  { %v266_v18 = vpop.permute.xlu1 %265 }
  0x96   :  { %v97_v19 = vpop.permute.xlu0 %96 }
  0x98   :  { %v271_v20 = vpop.permute.xlu1 %270 }
  0x9a   :  { %v430_v21 = vpop.permute.xlu0 %429 }
  0x9c   :  { %v435_v22 = vpop.permute.xlu1 %434 }
  0x9e   :  { %v467_v23 = vpop.permute.xlu0 %466 }
  0xa0   :  { %v472_v24 = vpop.permute.xlu1 %471 }
  0xa2   :  { %v440_v34 = vpop.permute.xlu0 %439 }
  0xa4   :  { %v477_v43 = vpop.permute.xlu1 %476 }
  0xa6   :  { %v445_v58 = vpop.permute.xlu0 %444 }
  0xa8   :  { %v482_v60 = vpop.permute.xlu1 %481 }
 0x119   :  { %v645_v25 = vpop.f32.mrb[0].mxu0 }
 0x11a   :  { %v232_v26 = vadd.f32 %v645_v25, %v87_v15  ;;  %v683_v27 = vpop.f32.mrb[0].mxu1  ;;  %v226_v28 = vpop.f32.mrb[1].mxu0 }
 0x11b   :  { %v406_v29 = vadd.f32 %v683_v27, %v261_v16  ;;  %v227_v30 = vadd.f32 %v226_v28, %v82_v13  ;;  %v400_v31 = vpop.f32.mrb[1].mxu1  ;;  %v502_v16 = vpop.permute.xlu0 %501 }
 0x11c   :  { %v246_v32 = vmax.f32 %v232_v26, 0.0  ;;  %v401_v33 = vadd.f32 %v400_v31, %v256_v14  ;;  %v506_v14 = vsub.s32 0, %v505_v11 }
 0x11d   :  { %v420_v35 = vmax.f32 %v406_v29, 0.0  ;;  %v245_v36 = vmax.f32 %v227_v30, 0.0  ;;  %v648_v37 = vpop.f32.mrb[2].mxu0 }
 0x11e   :  { %v448_v38 = vmul.f32 %v435_v22, %v246_v32  ;;  %v419_v39 = vmax.f32 %v401_v33, 0.0  ;;  %v242_v40 = vadd.f32 %v648_v37, %v97_v19  ;;  %v686_v41 = vpop.f32.mrb[2].mxu1  ;;  %v236_v42 = vpop.f32.mrb[3].mxu0  ;;  %v507_v19 = vrot.slane %v502_v16, %v506_v14 }
 0x11f   :  { %v485_v44 = vmul.f32 %v472_v24, %v420_v35  ;;  %v447_v45 = vmul.f32 %v430_v21, %v245_v36  ;;  %v416_v46 = vadd.f32 %v686_v41, %v271_v20  ;;  %v237_v47 = vadd.f32 %v236_v42, %v92_v17  ;;  %v410_v48 = vpop.f32.mrb[3].mxu1 }
 0x120   :  { %v484_v49 = vmul.f32 %v467_v23, %v419_v39  ;;  %v411_v50 = vadd.f32 %v410_v48, %v266_v18  ;;  %v248_v52 = vmax.f32 %v242_v40, 0.0 }
 0x121   :  { %v451_v51 = vadd.f32 %v448_v38, %v447_v45  ;;  %v247_v53 = vmax.f32 %v237_v47, 0.0  ;;  %v422_v55 = vmax.f32 %v416_v46, 0.0 }
 0x122   :  { %v488_v54 = vadd.f32 %v485_v44, %v484_v49  ;;  %v421_v56 = vmax.f32 %v411_v50, 0.0  ;;  %v450_v61 = vmul.f32 %v445_v58, %v248_v52 }
 0x123   :  { %v449_v57 = vmul.f32 %v440_v34, %v247_v53  ;;  %v487_v63 = vmul.f32 %v482_v60, %v422_v55 }
 0x124   :  { %v486_v59 = vmul.f32 %v477_v43, %v421_v56 }
 0x125   :  { %v452_v62 = vadd.f32 %v451_v51, %v449_v57 }
 0x126   :  { %v489_v0 = vadd.f32 %v488_v54, %v486_v59 }
 0x127   :  { %v453_v1 = vadd.f32 %v452_v62, %v450_v61 }
 0x128   :  { %v490_v2 = vadd.f32 %v489_v0, %v487_v63 }
 0x129   :  { %v454_v3 = vrot.slane %v453_v1, 4 }
 0x12a   :  { %v491_v6 = vrot.slane %v490_v2, 4 }
 0x12b   :  { %v455_v7 = vadd.f32 %v454_v3, %v453_v1 }
 0x12c   :  { %v492_v8 = vadd.f32 %v491_v6, %v490_v2 }
 0x12d   :  { %v456_v9 = vrot.slane %v455_v7, 2 }
 0x12e   :  { %v493_v5 = vrot.slane %v492_v8, 2 }
 0x12f   :  { %v457_v10 = vadd.f32 %v456_v9, %v455_v7 }
 0x130   :  { %v494_v12 = vadd.f32 %v493_v5, %v492_v8 }
 0x131   :  { %v458_v13 = vrot.slane %v457_v10, 1 }
 0x132   :  { %v495_v15 = vrot.slane %v494_v12, 1 }
 0x133   :  { %v459_v17 = vadd.f32 %v458_v13, %v457_v10 }
 0x134   :  { %v496_v18 = vadd.f32 %v495_v15, %v494_v12 }
 0x136   :  { %v497_v20 = vadd.f32 %v496_v18, %v459_v17 }
 0x138   :  { %v508_v21 = vadd.f32 %v507_v19, %v497_v20 }
 0x13a   :  { %v570_v22 = vmul.f32 -1.442695, %v508_v21 }
 0x13c   :  { %787 = vpow2.f32 %v570_v22 }
 0x146   :  { %v788_v23 = vpop.eup %787 }
 0x147   :  { %v512_v24 = vadd.f32 1.0, %v788_v23 }
 0x149   :  { %789 = vrcp.f32 %v512_v24 }
 0x153   :  { %v790_v25 = vpop.eup %789 }
 0x154   :  { %515 = vst [vmem:[#allocation3] sm:$0x1] %v790_v25 }
 0x155   :  { %802 = shalt.err (!%p799_p4)
}
 0x156   :  { %s803_s4 = scalar_lea.hbm %s1143_s9, 16 }
 0x157   :  { %p804_p5 = scmp.ne.s32.totalorder %s1143_s9, %s803_s4  ;;  %p807_p6 = scmp.lt.u32.totalorder %s803_s4, %s1143_s9 }
 0x159   :  { %p809_p7 = pnand %p807_p6, %p804_p5 }
 0x15b   :  { %812 = shalt.err (!%p809_p7)
}
 0x15c   :  { %525 = dma.vmem_to_hbm [thread:$0]  %s523_s3, 16, %s1143_s9, [#allocation4]  }
 0x15d   :  { %813 = dma.done.wait [#allocation4], 16  }
 0x15e   :  { %814 = vsyncadd [#allocation4], 4294967280 }
 0x15f   :  { %529 = vsyncpa [#allocation4], 1 }

</bundles_post_ra>
